<compile_context>
chip_gen: v7x
topology: tpu7x:2x2x1
jax: 0.10.0
libtpu: 0.0.40
codegen_flags: <defaults>
</compile_context>

<pallas_src>
import jax
import jax.numpy as jnp
from jax.experimental import pallas as pl
from jax.experimental.pallas import tpu as pltpu


def _round_up(x, m):
    return (x + m - 1) // m * m


def _chip_defaults():
    """(block_b, vmem_limit_bytes) gated on VMEM capacity of the local chip."""
    block_b, vmem_limit = 128, 32 * 1024 * 1024          # conservative / v7x-safe
    try:
        info = pltpu.get_tpu_info()
        vmem = getattr(info, "vmem_capacity_bytes", None)
        if vmem is not None and vmem > 64 * 1024 * 1024:  # v5e / v6e (128 MiB VMEM)
            block_b, vmem_limit = 256, 64 * 1024 * 1024
    except Exception:
        pass
    return block_b, vmem_limit


def _pick_batch_tile(B, block_b):
    """Batch tile: multiple of 8 (layout-legal lane-dense output block) and small
    enough that the 'parallel' grid axis has >= 2 steps (uses both v7x TCs)."""
    if B <= 8:
        return B
    return min(block_b, _round_up(pl.cdiv(B, 2), 8))


def _lang_project_kernel(l_ref, m_ref, inv_ref, w1_ref, b1_ref, w2_ref, b2_ref, out_ref):
    # l_ref:   (tb, N, C_in)  channels-last: C_in on lanes, N on sublanes (bf16 or f32)
    # m_ref:   (tb, N, 1)     0/1 token mask, bf16 (exact)
    # inv_ref: (tb, 1)        exact per-row 1/num_valid_tokens, f32 (host-computed)
    # w1_ref:  (C_in, H_pad)  bf16, pre-transposed, zero-padded to 128-lane multiple
    # b1_ref:  (1, H_pad)     f32
    # w2_ref:  (H_pad, O_pad) bf16
    # b2_ref:  (1, O_pad)     f32
    # out_ref: (tb, O_pad)    f32, lane-dense store
    tb, n_l, c_in = l_ref.shape

    # Masked sum over the token (sublane) axis, chunked through a small f32
    # accumulator: no full (tb, N, C) f32 temp is ever materialized.
    acc = jnp.zeros((tb, c_in), jnp.float32)
    for s in range(0, n_l, 8):                      # static, fully unrolled
        size = min(8, n_l - s)
        lc = l_ref[:, s:s + size, :].astype(jnp.float32)   # (tb, size, C) small temp
        mc = m_ref[:, s:s + size, :].astype(jnp.float32)   # (tb, size, 1) -> lane bcast
        acc = acc + jnp.sum(lc * mc, axis=1)               # (tb, C) f32

    pooled = acc * inv_ref[...]                      # exact mean (row-scale pattern)

    # Linear -> ReLU -> Linear on the MXU: bf16 operands, f32 accumulation.
    h = jnp.dot(pooled.astype(jnp.bfloat16), w1_ref[...],
                preferred_element_type=jnp.float32) + b1_ref[...]
    h = jnp.maximum(h, 0.0)
    out = jnp.dot(h.astype(jnp.bfloat16), w2_ref[...],
                  preferred_element_type=jnp.float32) + b2_ref[...]

    out_ref[...] = out.astype(out_ref.dtype)


def prepare_params(params, lane_multiple=128, weight_dtype=jnp.bfloat16):
    """One-time (init-time) repack of the PyTorch-layout Linear params.

    Transposes to (in, out) so the kernel computes y = x @ W, zero-pads the output
    dims to a 128-lane multiple (lane-dense matmul results + final store), and
    stores the weights in bf16 (half VMEM residency, native MXU operand dtype).
    Biases stay f32 (added after the f32 accumulation). Call once, not per forward.
    """
    w1, b1, w2, b2 = params                               # PyTorch layout: (out, in), (out,)
    c_hidden, c_in = w1.shape
    c_out = w2.shape[0]
    hp = _round_up(c_hidden, lane_multiple)
    op = _round_up(c_out, lane_multiple)
    w1_t = jnp.zeros((c_in, hp), weight_dtype).at[:, :c_hidden].set(w1.T.astype(weight_dtype))
    b1_r = jnp.zeros((1, hp), jnp.float32).at[:, :c_hidden].set(b1.astype(jnp.float32))
    w2_t = jnp.zeros((hp, op), weight_dtype).at[:c_hidden, :c_out].set(w2.T.astype(weight_dtype))
    b2_r = jnp.zeros((1, op), jnp.float32).at[:, :c_out].set(b2.astype(jnp.float32))
    return (w1_t, b1_r, w2_t, b2_r), c_out


def lang_project(x, l, l_mask, prepared_params, c_out, *, block_b=None,
                 channels_last=False, compute_dtype=jnp.bfloat16):
    """Pallas implementation of LangProject.forward(x, l, l_mask).

    x      : (B, C, H, W)   unused by the reference forward (API parity only)
    l      : (B, C_in, N)   language features (PyTorch channels-first), or
             (B, N, C_in) if channels_last=True (no extra HBM pass over l)
    l_mask : (B, N, 1)      token-validity mask (0/1)
    returns: (B, 1, c_out)  float32

    Note (parity with the PyTorch reference): an all-zero mask row divides by zero.
    Note: when B is tiled and B % tb != 0, the padded rows of the last tile compute
    on garbage but their stores are masked, so valid rows are unaffected.
    """
    del x  # unused in the reference forward
    w1_t, b1_r, w2_t, b2_r = prepared_params

    if channels_last:
        l_nc = l                                           # already (B, N, C_in)
        B, n_l, c_in = l.shape
    else:
        # One relayout pass is unavoidable for channels-first input, but fuse the
        # bf16 downcast into it: the materialized copy (and the kernel's subsequent
        # HBM read of l) is half the bytes.
        B, c_in, n_l = l.shape
        l_cast = l.astype(compute_dtype) if (compute_dtype is not None and
                                             l.dtype != compute_dtype) else l
        l_nc = jnp.transpose(l_cast, (0, 2, 1))            # (B, N, C_in)

    # Tiny host-side mask prep (B*N elements, negligible vs. l):
    #   * exact 0/1 mask in bf16 (halves its lane-padded VMEM footprint)
    #   * exact per-row inverse token count in f32 -> no in-kernel division at all
    l_mask = l_mask.reshape(B, n_l, 1)
    mask01 = l_mask.astype(jnp.bfloat16)
    inv_len = 1.0 / jnp.sum(l_mask.astype(jnp.float32), axis=1)          # (B, 1)

    hp = w1_t.shape[1]
    op = w2_t.shape[1]

    default_block_b, vmem_limit = _chip_defaults()
    if block_b is None:
        block_b = default_block_b
    tb = _pick_batch_tile(B, block_b)
    assert tb == B or tb % 8 == 0
    grid = (pl.cdiv(B, tb),)

    bcast2d = lambda i: (0, 0)                             # weights resident across the grid
    out_padded = pl.pallas_call(
        _lang_project_kernel,
        out_shape=jax.ShapeDtypeStruct((B, op), jnp.float32),
        grid=grid,
        in_specs=[
            pl.BlockSpec((tb, n_l, c_in), lambda i: (i, 0, 0)),
            pl.BlockSpec((tb, n_l, 1), lambda i: (i, 0, 0)),
            pl.BlockSpec((tb, 1), lambda i: (i, 0)),
            pl.BlockSpec((c_in, hp), bcast2d),
            pl.BlockSpec((1, hp), bcast2d),
            pl.BlockSpec((hp, op), bcast2d),
            pl.BlockSpec((1, op), bcast2d),
        ],
        out_specs=pl.BlockSpec((tb, op), lambda i: (i, 0)),
        compiler_params=pltpu.CompilerParams(
            dimension_semantics=("parallel",),             # megacore: batch tiles across TCs
            vmem_limit_bytes=vmem_limit,                   # per-generation cap
        ),
    )(l_nc, mask01, inv_len, w1_t, b1_r, w2_t, b2_r)

    # unsqueeze(1); drop lane padding only if any was added.
    if op == c_out:
        return out_padded[:, None, :]
    return out_padded[:, None, :c_out]


def init_params(key, l_in_channels, l_out_channels):
    """Deterministic init matching nn.Linear(l_in, l_out) / nn.Linear(l_out, l_out)."""
    k1, k2, k3, k4 = jax.random.split(key, 4)
    s1 = 1.0 / jnp.sqrt(l_in_channels)
    s2 = 1.0 / jnp.sqrt(l_out_channels)
    w1 = jax.random.uniform(k1, (l_out_channels, l_in_channels), jnp.float32, -s1, s1)
    b1 = jax.random.uniform(k2, (l_out_channels,), jnp.float32, -s1, s1)
    w2 = jax.random.uniform(k3, (l_out_channels, l_out_channels), jnp.float32, -s2, s2)
    b2 = jax.random.uniform(k4, (l_out_channels,), jnp.float32, -s2, s2)
    return w1, b1, w2, b2


def _reference(l, l_mask, params):
    """Pure-JAX reference mirroring the PyTorch forward, for correctness check."""
    w1, b1, w2, b2 = params
    m = jnp.transpose(l_mask, (0, 2, 1))                  # (B, 1, N)
    pooled = jnp.sum(l * m, axis=-1) / jnp.sum(m, axis=-1)
    h = jnp.maximum(pooled @ w1.T + b1, 0.0)
    return (h @ w2.T + b2)[:, None, :]


if __name__ == "__main__":
    key = jax.random.PRNGKey(0)

    # ---- Test 1: small shapes implied by the module (B=2, C=32, N=8) -------------
    k_x, k_l, k_p, k2_l, k2_p = jax.random.split(key, 5)
    B, c_in, c_out, n_l = 2, 32, 32, 8

    x = jax.random.normal(k_x, (B, 4, 16, 16), jnp.float32)             # NCHW, unused
    l = jax.random.normal(k_l, (B, c_in, n_l), jnp.float32)             # (B, C_in, N)
    lens = jnp.array([5, 8], dtype=jnp.int32)
    l_mask = (jnp.arange(n_l)[None, :] < lens[:, None]).astype(jnp.float32)[:, :, None]

    params = init_params(k_p, c_in, c_out)
    prepared, cout = prepare_params(params)              # one-time bf16 repack (init time)

    out = jax.block_until_ready(lang_project(x, l, l_mask, prepared, cout))
    ref = _reference(l, l_mask, params)
    assert out.shape == (B, 1, c_out), out.shape
    # bf16 l + bf16 weights (f32 accumulation) -> ~1e-3-level error at these sizes
    assert jnp.allclose(out, ref, atol=2e-2, rtol=2e-2), float(jnp.max(jnp.abs(out - ref)))

    # channels-last producer path: no wrapper transpose at all, f32 l straight in
    l_nc = jnp.transpose(l, (0, 2, 1))
    out_cl = jax.block_until_ready(
        lang_project(x, l_nc, l_mask, prepared, cout, channels_last=True))
    assert out_cl.shape == (B, 1, c_out)
    assert jnp.allclose(out_cl, ref, atol=2e-2, rtol=2e-2), float(jnp.max(jnp.abs(out_cl - ref)))

    # ---- Test 2: tiled batch + multi-chunk pooling + unpadded output -------------
    B2, c2_in, c2_out, n2 = 16, 128, 128, 16
    l2 = jax.random.normal(k2_l, (B2, c2_in, n2), jnp.float32)
    lens2 = (jnp.arange(B2, dtype=jnp.int32) % n2) + 1
    l2_mask = (jnp.arange(n2)[None, :] < lens2[:, None]).astype(jnp.float32)[:, :, None]
    params2 = init_params(k2_p, c2_in, c2_out)
    prepared2, cout2 = prepare_params(params2)

    out2 = jax.block_until_ready(lang_project(x, l2, l2_mask, prepared2, cout2))
    ref2 = _reference(l2, l2_mask, params2)
    assert out2.shape == (B2, 1, c2_out), out2.shape
    assert jnp.allclose(out2, ref2, atol=3e-2, rtol=3e-2), float(jnp.max(jnp.abs(out2 - ref2)))

    print("KERNEL_OK")
</pallas_src>

<mosaic_0001>
module attributes {stable_mosaic.version = 11 : i64} {
  func.func @_lang_project_kernel(%arg0: i32, %arg1: memref<2x8x32xbf16, #tpu.memory_space<vmem>>, %arg2: memref<2x8x1xbf16, #tpu.memory_space<vmem>>, %arg3: memref<2x1xf32, #tpu.memory_space<vmem>>, %arg4: memref<32x128xbf16, #tpu.memory_space<vmem>>, %arg5: memref<1x128xf32, #tpu.memory_space<vmem>>, %arg6: memref<128x128xbf16, #tpu.memory_space<vmem>>, %arg7: memref<1x128xf32, #tpu.memory_space<vmem>>, %arg8: memref<2x128xf32, #tpu.memory_space<vmem>>) attributes {dimension_semantics = [#tpu.dimension_semantics<parallel>], iteration_bounds = array<i64: 1>, scalar_prefetch = 0 : i64, scratch_operands = 0 : i64, tpu.core_type = #tpu.core_type<tc>, window_params = [{transform_indices = @transform_0, window_bounds = array<i64: 2, 8, 32>}, {transform_indices = @transform_1, window_bounds = array<i64: 2, 8, 1>}, {transform_indices = @transform_2, window_bounds = array<i64: 2, 1>}, {pipeline_mode = #tpu.pipeline_mode<synchronous>, transform_indices = @transform_3, window_bounds = array<i64: 32, 128>}, {pipeline_mode = #tpu.pipeline_mode<synchronous>, transform_indices = @transform_4, window_bounds = array<i64: 1, 128>}, {pipeline_mode = #tpu.pipeline_mode<synchronous>, transform_indices = @transform_5, window_bounds = array<i64: 128, 128>}, {pipeline_mode = #tpu.pipeline_mode<synchronous>, transform_indices = @transform_6, window_bounds = array<i64: 1, 128>}, {transform_indices = @transform_7, window_bounds = array<i64: 2, 128>}]} {
    %cst = arith.constant 0.000000e+00 : f32
    %0 = vector.broadcast %cst : f32 to vector<2x32xf32>
    %c0 = arith.constant 0 : index
    %c0_0 = arith.constant 0 : index
    %c0_1 = arith.constant 0 : index
    %1 = vector.load %arg1[%c0, %c0_0, %c0_1] : memref<2x8x32xbf16, #tpu.memory_space<vmem>>, vector<2x8x32xbf16>
    %2 = arith.extf %1 : vector<2x8x32xbf16> to vector<2x8x32xf32>
    %c0_2 = arith.constant 0 : index
    %c0_3 = arith.constant 0 : index
    %c0_4 = arith.constant 0 : index
    %3 = vector.load %arg2[%c0_2, %c0_3, %c0_4] : memref<2x8x1xbf16, #tpu.memory_space<vmem>>, vector<2x8x1xbf16>
    %4 = arith.extf %3 : vector<2x8x1xbf16> to vector<2x8x1xf32>
    %5 = vector.broadcast %4 : vector<2x8x1xf32> to vector<2x8x32xf32>
    %6 = arith.mulf %2, %5 : vector<2x8x32xf32>
    %cst_5 = arith.constant dense<0.000000e+00> : vector<2x32xf32>
    %7 = vector.multi_reduction <add>, %6, %cst_5 [1] : vector<2x8x32xf32> to vector<2x32xf32>
    %8 = arith.addf %0, %7 : vector<2x32xf32>
    %c0_6 = arith.constant 0 : index
    %c0_7 = arith.constant 0 : index
    %9 = vector.load %arg3[%c0_6, %c0_7] : memref<2x1xf32, #tpu.memory_space<vmem>>, vector<2x1xf32>
    %10 = vector.broadcast %9 : vector<2x1xf32> to vector<2x32xf32>
    %11 = arith.mulf %8, %10 : vector<2x32xf32>
    %12 = arith.truncf %11 : vector<2x32xf32> to vector<2x32xbf16>
    %c0_8 = arith.constant 0 : index
    %c0_9 = arith.constant 0 : index
    %13 = vector.load %arg4[%c0_8, %c0_9] : memref<32x128xbf16, #tpu.memory_space<vmem>>, vector<32x128xbf16>
    %cst_10 = arith.constant dense<0.000000e+00> : vector<2x128xf32>
    %14 = tpu.matmul %12, %13, %cst_10 {dimension_numbers = #tpu.dot_dimension_numbers<[1], [0], [0], [1], [0, 0, 1, 1], [], []>} : vector<2x32xbf16>, vector<32x128xbf16>, vector<2x128xf32> -> vector<2x128xf32>
    %c0_11 = arith.constant 0 : index
    %c0_12 = arith.constant 0 : index
    %15 = vector.load %arg5[%c0_11, %c0_12] : memref<1x128xf32, #tpu.memory_space<vmem>>, vector<1x128xf32>
    %16 = vector.broadcast %15 : vector<1x128xf32> to vector<2x128xf32>
    %17 = arith.addf %14, %16 : vector<2x128xf32>
    %cst_13 = arith.constant 0.000000e+00 : f32
    %18 = vector.broadcast %cst_13 : f32 to vector<2x128xf32>
    %19 = arith.maximumf %17, %18 : vector<2x128xf32>
    %20 = arith.truncf %19 : vector<2x128xf32> to vector<2x128xbf16>
    %c0_14 = arith.constant 0 : index
    %c0_15 = arith.constant 0 : index
    %21 = vector.load %arg6[%c0_14, %c0_15] : memref<128x128xbf16, #tpu.memory_space<vmem>>, vector<128x128xbf16>
    %cst_16 = arith.constant dense<0.000000e+00> : vector<2x128xf32>
    %22 = tpu.matmul %20, %21, %cst_16 {dimension_numbers = #tpu.dot_dimension_numbers<[1], [0], [0], [1], [0, 0, 1, 1], [], []>} : vector<2x128xbf16>, vector<128x128xbf16>, vector<2x128xf32> -> vector<2x128xf32>
    %c0_17 = arith.constant 0 : index
    %c0_18 = arith.constant 0 : index
    %23 = vector.load %arg7[%c0_17, %c0_18] : memref<1x128xf32, #tpu.memory_space<vmem>>, vector<1x128xf32>
    %24 = vector.broadcast %23 : vector<1x128xf32> to vector<2x128xf32>
    %25 = arith.addf %22, %24 : vector<2x128xf32>
    %c0_19 = arith.constant 0 : index
    %c0_20 = arith.constant 0 : index
    %26 = vector.load %arg8[%c0_19, %c0_20] : memref<2x128xf32, #tpu.memory_space<vmem>>, vector<2x128xf32>
    tpu.vector_store %arg8[%c0_19, %c0_20], %25 {strides = array<i32>} : memref<2x128xf32, #tpu.memory_space<vmem>>, vector<2x128xf32>,
    return
  }
  func.func @transform_0(%arg0: i32) -> (i32, i32, i32) {
    %c0_i32 = arith.constant 0 : i32
    %c0_i32_0 = arith.constant 0 : i32
    %c0_i32_1 = arith.constant 0 : i32
    return %arg0, %c0_i32, %c0_i32_0 : i32, i32, i32
  }
  func.func @transform_1(%arg0: i32) -> (i32, i32, i32) {
    %c0_i32 = arith.constant 0 : i32
    %c0_i32_0 = arith.constant 0 : i32
    %c0_i32_1 = arith.constant 0 : i32
    return %arg0, %c0_i32, %c0_i32_0 : i32, i32, i32
  }
  func.func @transform_2(%arg0: i32) -> (i32, i32) {
    %c0_i32 = arith.constant 0 : i32
    %c0_i32_0 = arith.constant 0 : i32
    return %arg0, %c0_i32 : i32, i32
  }
  func.func @transform_3(%arg0: i32) -> (i32, i32) {
    %c0_i32 = arith.constant 0 : i32
    %c0_i32_0 = arith.constant 0 : i32
    %c0_i32_1 = arith.constant 0 : i32
    return %c0_i32, %c0_i32_0 : i32, i32
  }
  func.func @transform_4(%arg0: i32) -> (i32, i32) {
    %c0_i32 = arith.constant 0 : i32
    %c0_i32_0 = arith.constant 0 : i32
    %c0_i32_1 = arith.constant 0 : i32
    return %c0_i32, %c0_i32_0 : i32, i32
  }
  func.func @transform_5(%arg0: i32) -> (i32, i32) {
    %c0_i32 = arith.constant 0 : i32
    %c0_i32_0 = arith.constant 0 : i32
    %c0_i32_1 = arith.constant 0 : i32
    return %c0_i32, %c0_i32_0 : i32, i32
  }
  func.func @transform_6(%arg0: i32) -> (i32, i32) {
    %c0_i32 = arith.constant 0 : i32
    %c0_i32_0 = arith.constant 0 : i32
    %c0_i32_1 = arith.constant 0 : i32
    return %c0_i32, %c0_i32_0 : i32, i32
  }
  func.func @transform_7(%arg0: i32) -> (i32, i32) {
    %c0_i32 = arith.constant 0 : i32
    %c0_i32_0 = arith.constant 0 : i32
    return %arg0, %c0_i32 : i32, i32
  }
}

</mosaic_0001>

<bundles_post_ra>
// kernel: tpu_custom_call.1
= control target key start
LH: loop header
LB: loop body
LE: loop exit
PB: predicated region body
PF: predicated region fallthrough
CT: control target
= control target key end

     0   :  { %12 = vsyncpa [#allocation3], 0  ;;  %s529_s0 = inlined_call_operand.vmem [shape: bf16[2,8,32], index: 0, kind: input, shape index: {}]   ;;  %s530_s1 = inlined_call_operand.vmem [shape: bf16[2,8,1], index: 1, kind: input, shape index: {}]   ;;  %s531_s2 = inlined_call_operand.vmem [shape: f32[2,1], index: 2, kind: input, shape index: {}]   ;;  %s532_s3 = inlined_call_operand.vmem [shape: bf16[32,128], index: 3, kind: input, shape index: {}]   ;;  %s533_s4 = inlined_call_operand.vmem [shape: f32[1,128], index: 4, kind: input, shape index: {}]   ;;  %s534_s5 = inlined_call_operand.hbm [shape: bf16[128,128], index: 5, kind: input, shape index: {}]   ;;  %s535_s6 = inlined_call_operand.vmem [shape: f32[1,128], index: 6, kind: input, shape index: {}]   ;;  %s536_s7 = inlined_call_operand.hbm [shape: f32[2,128], index: 7, kind: output, shape index: {}]  }
   0x1   :  { %13 = vsyncpa [#allocation4], 0  ;;  %s422_s24 = smov [#allocation2]   ;;  %s374_s28 = scalar_lea.hbm %s534_s5, 1024 }
   0x2   :  { %s29_s25 = sshll.u32 %s422_s24, 4  ;;  %p375_p0 = scmp.ne.s32.totalorder %s534_s5, %s374_s28  ;;  %s30_s25 = int_to_ptr.vmem [resolvable:$true] %s29_s25 }
   0x3   :  { %p378_p1 = scmp.lt.u32.totalorder %s374_s28, %s534_s5 }
   0x5   :  { %p380_p2 = pnand %p378_p1, %p375_p0 }
   0x7   :  { %383 = shalt.err (!%p380_p2)
}
   0x8   :  { %s384_s10 = scalar_lea.vmem %s30_s25, 1024  ;;  %p389_p4 = scmp.lt.s32.totalorder %s30_s25, %s30_s25 }
   0x9   :  { %p385_p3 = scmp.ne.s32.totalorder %s30_s25, %s384_s10  ;;  %p390_p5 = scmp.lt.s32.totalorder %s384_s10, %s384_s10 }
   0xb   :  { %p391_p6 = por %p390_p5, %p389_p4 }
   0xd   :  { %p392_p7 = pnand %p391_p6, %p385_p3 }
   0xf   :  { %395 = shalt.err (!%p392_p7)
}
  0x10   :  { %s423_s11 = smov 64   ;;  %s424_s12 = smov 4  }
  0x11   :  { %35 = dma.hbm_to_vmem [thread:$0]  %s534_s5, 1024, %s30_s25, [#allocation3], %s423_s11, %s423_s11, %s424_s12  }
  0x12   :  { %418 = dma.done.wait [#allocation3], 1024  }
  0x13   :  { %419 = vsyncadd [#allocation3], 4294966272  ;;  %v425_v0 = vmov 0   ;;  %v312_v1 = vld [vmem:[%s530_s1] sm:$0xff]   ;;  %v426_v6 = vmov 0.0   ;;  %v365_v7 = vld [vmem:[%s532_s3 + $0x8] sm:$0xff]  }
  0x14   :  { %362 = vset.pattern.permute.xlu0 %v425_v0  ;;  %363 = vset.pattern.permute.xlu1 %v425_v0  ;;  %v79_v2 = vld [vmem:[%s531_s2] sm:$0x3]  ;;  %v314_v3 = vunpack.c.h.bf16 %v312_v1  ;;  %v313_v4 = vunpack.c.l.bf16 %v312_v1  ;;  %vm427_vm0 = vmmov 0   ;;  %v367_v9 = vld [vmem:[#allocation2 + $0x8] sm:$0xff]   ;;  %v368_v10 = vld [vmem:[#allocation2 + $0x10] sm:$0xff]   ;;  %vm62_vm1 = vcmask 261120  }
  0x15   :  { %82 = vperm.xlu1 %363, %v79_v2   ;;  %v364_v5 = vld [vmem:[%s532_s3] sm:$0xff]   ;;  %327 = vmatprep.subr.bf16.mxu0 %v426_v6  ;;  %v369_v11 = vld [vmem:[#allocation2 + $0x18] sm:$0xff]   ;;  %v371_v13 = vld [vmem:[#allocation2 + $0x28] sm:$0xff]   ;;  %vm107_vm2 = vcmask 1041409   ;;  %s428_s24 = smov [#allocation5]  }
  0x16   :  { %57 = vperm.xlu0 %362, %v314_v3   ;;  %335 = vmatprep.subr.bf16.mxu1 %v426_v6  ;;  %v366_v8 = vld [vmem:[#allocation2] sm:$0xff]   ;;  %v372_v46 = vld [vmem:[#allocation2 + $0x30] sm:$0xff]   ;;  %v373_v47 = vld [vmem:[#allocation2 + $0x38] sm:$0xff]   ;;  %s285_s25 = sshll.u32 %s428_s24, 4  ;;  %s286_s25 = int_to_ptr.vmem [resolvable:$true] %s285_s25 }
  0x17   :  { %328 = vmatpush3.bf16.msra.mxu0 %v364_v5  ;;  %331 = vmatprep.mubr.msk.bf16.mxu0 %vm427_vm0, %v426_v6  ;;  %v370_v12 = vld [vmem:[#allocation2 + $0x20] sm:$0xff]   ;;  %p401_p9 = scmp.lt.s32.totalorder %s286_s25, %s286_s25 }
  0x18   :  { %329 = vmatprep.subr.bf16.mxu0 %v426_v6  ;;  %351 = vmatprep.mubr.msk.bf16.mxu1 %vm427_vm0, %v426_v6  ;;  %v308_v14 = vld [vmem:[%s529_s0] sm:$0xff]  }
  0x19   :  { %336 = vmatpush3.bf16.msra.mxu1 %v366_v8  ;;  %v310_v15 = vunpack.c.h.bf16 %v308_v14  ;;  %v309_v18 = vunpack.c.l.bf16 %v308_v14  ;;  %v294_v48 = vld [vmem:[%s533_s4] ss:$0 sm:$0xff]  ;;  %s396_s4 = scalar_lea.vmem %s286_s25, 32 }
  0x1a   :  { %52 = vperm.xlu0 %362, %v313_v4   ;;  %337 = vmatprep.subr.bf16.mxu1 %v426_v6  ;;  %v298_v56 = vld [vmem:[%s535_s6] ss:$0 sm:$0xff]  ;;  %p397_p8 = scmp.ne.s32.totalorder %s286_s25, %s396_s4  ;;  %p402_p10 = scmp.lt.s32.totalorder %s396_s4, %s396_s4 }
  0x1b   :  { %330 = vmatpush3.bf16.msra.mxu0 %v365_v7 }
  0x1c   :  { %p403_p11 = por %p402_p10, %p401_p9 }
  0x1d   :  { %338 = vmatpush3.bf16.msra.mxu1 %v367_v9 }
  0x1e   :  { %339 = vmatprep.subr.bf16.mxu1 %v426_v6  ;;  %p404_p12 = pnand %p403_p11, %p397_p8 }
  0x21   :  { %340 = vmatpush3.bf16.msra.mxu1 %v368_v10 }
  0x22   :  { %341 = vmatprep.subr.bf16.mxu1 %v426_v6 }
  0x25   :  { %342 = vmatpush3.bf16.msra.mxu1 %v369_v11 }
  0x26   :  { %343 = vmatprep.subr.bf16.mxu1 %v426_v6 }
  0x29   :  { %344 = vmatpush3.bf16.msra.mxu1 %v370_v12 }
  0x2a   :  { %345 = vmatprep.subr.bf16.mxu1 %v426_v6 }
  0x2d   :  { %346 = vmatpush3.bf16.msra.mxu1 %v371_v13 }
  0x2e   :  { %347 = vmatprep.subr.bf16.mxu1 %v426_v6 }
  0x31   :  { %348 = vmatpush3.bf16.msra.mxu1 %v372_v46 }
  0x32   :  { %349 = vmatprep.subr.bf16.mxu1 %v426_v6 }
  0x35   :  { %350 = vmatpush3.bf16.msra.mxu1 %v373_v47 }
  0x94   :  { %v83_v27 = vpop.permute.xlu1 %82 }
  0x95   :  { %v58_v16 = vpop.permute.xlu0 %57  ;;  %v84_v32 = vrot.slane %v83_v27, 1 }
  0x96   :  { %v61_v17 = vmul.f32 %v310_v15, %v58_v16 }
  0x98   :  { %v70_v19 = vsel %vm62_vm1, %v61_v17, 0.0 }
  0x99   :  { %v71_v20 = vrot.slane %v70_v19, 4  ;;  %v53_v21 = vpop.permute.xlu0 %52 }
  0x9a   :  { %v60_v22 = vmul.f32 %v309_v18, %v53_v21 }
  0x9b   :  { %v72_v23 = vadd.f32 %v71_v20, %v70_v19 }
  0x9c   :  { %v63_v24 = vsel %vm62_vm1, %v60_v22, 0.0 }
  0x9d   :  { %v73_v25 = vrot.slane %v72_v23, 2  ;;  %v64_v26 = vrot.slane %v63_v24, 4 }
  0x9f   :  { %v74_v28 = vadd.f32 %v73_v25, %v72_v23  ;;  %v65_v29 = vadd.f32 %v64_v26, %v63_v24 }
  0xa1   :  { %v66_v30 = vrot.slane %v65_v29, 2  ;;  %v75_v31 = vrot.slane %v74_v28, 1 }
  0xa3   :  { %v67_v33 = vadd.f32 %v66_v30, %v65_v29  ;;  %v76_v34 = vadd.f32 %v75_v31, %v74_v28 }
  0xa5   :  { %v68_v35 = vrot.slane %v67_v33, 1  ;;  %v88_v36 = vmul.f32 %v84_v32, %v76_v34 }
  0xa7   :  { %v69_v37 = vadd.f32 %v68_v35, %v67_v33  ;;  %v90_v38 = vpack.c.bf16 %v88_v36, %v88_v36 }
  0xa9   :  { %v87_v39 = vmul.f32 %v83_v27, %v69_v37  ;;  %v105_v40 = vunpack.c.l.b16 %v90_v38 }
  0xab   :  { %v89_v41 = vpack.c.bf16 %v87_v39, %v87_v39  ;;  %v106_v43 = vrot.slane %v105_v40, 7 }
  0xad   :  { %v104_v42 = vunpack.c.l.b16 %v89_v41 }
  0xaf   :  { %v108_v44 = vsel %vm107_vm2, %v106_v43, %v104_v42 }
  0xb0   :  { %v109_v45 = vpack.c.b16 %v108_v44, %v108_v44 }
  0xb2   :  { %332 = vmatmul.mubr.msk.bf16.vlgmr.msra.gmra.mrb[0].mxu0 %vm62_vm1, %v109_v45 }
 0x185   :  { %v159_v49 = vpop.f32.mrb[0].mxu0 }
 0x186   :  { %v160_v50 = vadd.f32 %v294_v48, %v159_v49  ;;  %v333_v51 = vpop.f32.mrb[1].mxu0 }
 0x187   :  { %v162_v52 = vpop.f32.mrb[2].mxu0 }
 0x188   :  { %v165_v53 = vmax.f32 %v160_v50, 0.0  ;;  %v334_v54 = vpop.f32.mrb[3].mxu0 }
 0x18a   :  { %v166_v55 = vpack.c.bf16 %v165_v53, %v165_v53 }
 0x18c   :  { %352 = vmatmul.mubr.bf16.vlgmr.msra.gmra.mrb[0].mxu1 %v166_v55 }
 0x25f   :  { %v272_v57 = vpop.f32.mrb[0].mxu1 }
 0x260   :  { %v273_v58 = vadd.f32 %v298_v56, %v272_v57  ;;  %v353_v59 = vpop.f32.mrb[1].mxu1 }
 0x261   :  { %v275_v60 = vpop.f32.mrb[2].mxu1 }
 0x262   :  { %278 = vst [vmem:[#allocation5] sm:$0x3] %v273_v58  ;;  %v354_v61 = vpop.f32.mrb[3].mxu1 }
 0x263   :  { %407 = shalt.err (!%p404_p12)
}
 0x264   :  { %s408_s6 = scalar_lea.hbm %s536_s7, 32 }
 0x265   :  { %p409_p13 = scmp.ne.s32.totalorder %s536_s7, %s408_s6  ;;  %p412_p0 = scmp.lt.u32.totalorder %s408_s6, %s536_s7 }
 0x267   :  { %p414_p1 = pnand %p412_p0, %p409_p13 }
 0x269   :  { %417 = shalt.err (!%p414_p1)
}
 0x26a   :  { %288 = dma.vmem_to_hbm [thread:$0]  %s286_s25, 32, %s536_s7, [#allocation4]  }
 0x26b   :  { %420 = dma.done.wait [#allocation4], 32  }
 0x26c   :  { %421 = vsyncadd [#allocation4], 4294967264 }
 0x26d   :  { %292 = vsyncpa [#allocation3], 1 }
 0x26e   :  { %293 = vsyncpa [#allocation4], 1 }

</bundles_post_ra>
